<compile_context>
chip_gen: v6e
topology: v6e:2x2x1
jax: 0.10.0
libtpu: 0.0.40
codegen_flags: <defaults>
</compile_context>

<pallas_src>
import functools

import jax
import jax.numpy as jnp
import numpy as np
from jax import lax
from jax.experimental import pallas as pl
from jax.experimental.pallas import tpu as pltpu

KH = KW = 4     # kernel_size = 4
STRIDE = 2
PAD = 1
EPS = 1e-5      # BatchNorm2d default eps

# Max lanes per S tile.  Multiple of 128 (lane-dense, unmasked stores); capped
# so that the f32 tile intermediates stay well inside the vreg file / VMEM on
# every generation (v7x: 64 MiB physical VMEM; footprint here is < 1 MiB/step).
_MAX_S_TILE = 1024


# ----------------------------------------------------------------------------
# Kernels.
#   x9_ref   : (9*Cin, S_TILE)  bf16   the 9 shifted input slabs (dedup'd im2col)
#   w9_ref   : (4*Cout, 9*Cin)  bf16   per-parity weights embedded in 3x3 shifts
#   b4_ref   : (4*Cout, 1)      f32    conv bias replicated over parities
#   y_ref    : (4*Cout, S_TILE)        conv(+act) output tile (lane-dense store)
#   psum_ref : (1, 4*Cout, 2)   f32    per-tile [sum, sum-of-squares] per row
# ----------------------------------------------------------------------------
def _convt_stats_kernel(x9_ref, w9_ref, b4_ref, y_ref, psum_ref):
    # One fused MXU dot produces all 4 output parities (M=4*Cout, K=9*Cin).
    y = jnp.dot(w9_ref[...], x9_ref[...], preferred_element_type=jnp.float32)
    y = y + b4_ref[...]                                   # (4*Cout, S_TILE) f32
    y_ref[...] = y.astype(y_ref.dtype)                    # bf16 staging to HBM
    # BatchNorm partial sums (computed from the f32 accumulator, not the bf16
    # store), reduced over lanes only; parity fold happens in the wrapper.
    s1 = jnp.sum(y, axis=1, keepdims=True)                # (4*Cout, 1)
    s2 = jnp.sum(y * y, axis=1, keepdims=True)            # (4*Cout, 1)
    psum_ref[...] = jnp.concatenate([s1, s2], axis=1)[None]


def _bn_relu_kernel(y_ref, scale_ref, shift_ref, out_ref):
    y = y_ref[...].astype(jnp.float32)                    # elementwise in f32 (v5e-safe)
    out_ref[...] = jnp.maximum(y * scale_ref[...] + shift_ref[...], 0.0).astype(out_ref.dtype)


def _convt_tanh_kernel(x9_ref, w9_ref, b4_ref, out_ref):
    y = jnp.dot(w9_ref[...], x9_ref[...], preferred_element_type=jnp.float32)
    out_ref[...] = jnp.tanh(y + b4_ref[...]).astype(out_ref.dtype)


# ----------------------------------------------------------------------------
# Wrapper-side layout plumbing (small, fused by XLA under jit).
# ----------------------------------------------------------------------------
def _choose_s_tile(S, max_tile=_MAX_S_TILE):
    """Largest multiple of 128 that divides S and is <= max_tile (keeps every
    tile full -> exact BN partial sums, lane-dense stores)."""
    best = None
    t = 128
    while t <= min(S, max_tile):
        if S % t == 0:
            best = t
        t += 128
    return best if best is not None else S


def _build_x9(x_nchw):
    """X9[(3*dy+dx)*Cin + ci, n*H*W + q*W + r] = xpad[n, ci, q+dy, r+dx].
    Only the 9 distinct shifts are materialized (vs 16 (parity,tap) slabs)."""
    N, Cin, H, W = x_nchw.shape
    xp = jnp.pad(x_nchw, ((0, 0), (0, 0), (1, 1), (1, 1)))
    xp = jnp.transpose(xp, (1, 0, 2, 3))                   # (Cin, N, H+2, W+2)
    slabs = []
    for dy in range(3):
        for dx in range(3):
            win = xp[:, :, dy:dy + H, dx:dx + W]           # (Cin, N, H, W)
            slabs.append(win.reshape(Cin, N * H * W))
    return jnp.concatenate(slabs, axis=0)                  # (9*Cin, S)


def _build_w9(w):
    """W9[(2*py+px)*Cout + co, (3*dy+dx)*Cin + ci] = w[ci, co, 3+py-2*dy, 3+px-2*dx]
    when dy-py in {0,1} and dx-px in {0,1}, else 0 (block support inside 3x3)."""
    Cin, Cout = w.shape[0], w.shape[1]
    W9 = jnp.zeros((4, Cout, 9, Cin), w.dtype)
    for py in range(2):
        for px in range(2):
            p = 2 * py + px
            for a in range(2):
                for c in range(2):
                    dy, dx = py + a, px + c
                    kh, kw = 3 - py - 2 * a, 3 - px - 2 * c
                    W9 = W9.at[p, :, 3 * dy + dx, :].set(w[:, :, kh, kw].T)
    return W9.reshape(4 * Cout, 9 * Cin)


# ----------------------------------------------------------------------------
# Public forward (matches TransposeConv2d.forward). Input / output are NCHW f32.
# ----------------------------------------------------------------------------
@functools.partial(jax.jit, static_argnames=("is_tanh", "compute_dtype"))
def transpose_conv2d_forward(x_nchw, params, *, is_tanh=False,
                             compute_dtype=jnp.bfloat16):
    x_nchw = x_nchw.astype(jnp.float32)
    N, Cin, H, W = x_nchw.shape
    Cout = params["weight"].shape[1]
    S = N * H * W
    s_tile = _choose_s_tile(S)
    n_tiles = S // s_tile

    # Streamed operands in bf16 (precision knob: pass compute_dtype=jnp.float32
    # to tighten; MXU still runs its default bf16 pass in that case).
    X9 = _build_x9(x_nchw).astype(compute_dtype)                       # (9*Cin, S)
    W9 = _build_w9(params["weight"].astype(jnp.float32)).astype(compute_dtype)
    b4 = jnp.tile(params["bias"].astype(jnp.float32), 4).reshape(4 * Cout, 1)

    x9_spec = pl.BlockSpec((9 * Cin, s_tile), lambda i: (0, i))
    w9_spec = pl.BlockSpec((4 * Cout, 9 * Cin), lambda i: (0, 0))      # resident
    vec_spec = pl.BlockSpec((4 * Cout, 1), lambda i: (0, 0))           # resident
    y_spec = pl.BlockSpec((4 * Cout, s_tile), lambda i: (0, i))
    cparams = pltpu.CompilerParams(
        dimension_semantics=("parallel",),       # shard S tiles across TCs (v7x)
        vmem_limit_bytes=32 * 1024 * 1024,       # safe on v5e/v6e/v7x; tiles << this
    )

    if is_tanh:
        y = pl.pallas_call(
            _convt_tanh_kernel,
            grid=(n_tiles,),
            in_specs=[x9_spec, w9_spec, vec_spec],
            out_specs=y_spec,
            out_shape=jax.ShapeDtypeStruct((4 * Cout, S), jnp.float32),
            compiler_params=cparams,
        )(X9, W9, b4)
    else:
        # Pass 1: conv + bias, bf16 staging of y, per-tile BN partial sums.
        psum_spec = pl.BlockSpec((1, 4 * Cout, 2), lambda i: (i, 0, 0))
        y_conv, psum = pl.pallas_call(
            _convt_stats_kernel,
            grid=(n_tiles,),
            in_specs=[x9_spec, w9_spec, vec_spec],
            out_specs=(y_spec, psum_spec),
            out_shape=(
                jax.ShapeDtypeStruct((4 * Cout, S), compute_dtype),
                jax.ShapeDtypeStruct((n_tiles, 4 * Cout, 2), jnp.float32),
            ),
            compiler_params=cparams,
        )(X9, W9, b4)

        # Finalize BatchNorm statistics in XLA (only (Cout, 2) values).
        sums = psum.sum(axis=0).reshape(4, Cout, 2).sum(axis=0)        # (Cout, 2)
        count = 4.0 * S
        mean = sums[:, 0] / count
        var = sums[:, 1] / count - mean * mean       # one-pass (E[y^2]-E[y]^2)
        var = jnp.maximum(var, 0.0)                  # guard cancellation -> <0
        scale = params["gamma"].astype(jnp.float32) * lax.rsqrt(var + EPS)
        shift = params["beta"].astype(jnp.float32) - mean * scale
        scale4 = jnp.tile(scale, 4).reshape(4 * Cout, 1)
        shift4 = jnp.tile(shift, 4).reshape(4 * Cout, 1)
        # TODO(synk): running_mean/running_var buffer updates (training-mode
        # side effect of nn.BatchNorm2d) are not materialized; forward output
        # is unaffected.

        # Pass 2: normalize + ReLU (tiled, parallel).
        y = pl.pallas_call(
            _bn_relu_kernel,
            grid=(n_tiles,),
            in_specs=[y_spec, vec_spec, vec_spec],
            out_specs=y_spec,
            out_shape=jax.ShapeDtypeStruct((4 * Cout, S), jnp.float32),
            compiler_params=cparams,
        )(y_conv, scale4, shift4)

    # Parity interleave back to NCHW (single small XLA transpose):
    #   ((2*py+px)*Cout+co, n*H*W+q*W+r)  ->  (n, co, 2q+py, 2r+px)
    y = y.reshape(2, 2, Cout, N, H, W)
    y = jnp.transpose(y, (3, 2, 4, 0, 5, 1)).reshape(N, Cout, 2 * H, 2 * W)
    return y


# ----------------------------------------------------------------------------
# Pure-JAX reference (correctness check).
# ----------------------------------------------------------------------------
def transpose_conv2d_reference(x_nchw, params, *, is_tanh=False):
    w, bias = params["weight"], params["bias"]
    x = jnp.transpose(x_nchw, (0, 2, 3, 1)).astype(jnp.float32)
    k = jnp.transpose(w, (2, 3, 0, 1))[::-1, ::-1, :, :]      # HWIO, flipped
    y = lax.conv_general_dilated(
        x, k, window_strides=(1, 1), padding=((2, 2), (2, 2)),
        lhs_dilation=(2, 2), dimension_numbers=("NHWC", "HWIO", "NHWC"),
        precision=lax.Precision.HIGHEST)
    y = y + bias[None, None, None, :]
    if is_tanh:
        z = jnp.tanh(y)
    else:
        m = jnp.mean(y, axis=(0, 1, 2), keepdims=True)
        v = jnp.mean((y - m) ** 2, axis=(0, 1, 2), keepdims=True)
        z = jnp.maximum((y - m) / jnp.sqrt(v + EPS) * params["gamma"] + params["beta"], 0.0)
    return jnp.transpose(z, (0, 3, 1, 2))


if __name__ == "__main__":
    key = jax.random.PRNGKey(0)
    kx, kw, kb = jax.random.split(key, 3)

    N, Cin, H, W = 2, 4, 16, 16
    Cout = 8

    x = jax.random.normal(kx, (N, Cin, H, W), jnp.float32)
    params = {
        "weight": 0.1 * jax.random.normal(kw, (Cin, Cout, KH, KW), jnp.float32),
        "bias": 0.05 * jax.random.normal(kb, (Cout,), jnp.float32),
        "gamma": jnp.ones((Cout,), jnp.float32),   # BatchNorm2d default init
        "beta": jnp.zeros((Cout,), jnp.float32),
    }

    # Kernel streams X9/W9 and the BN intermediate in bf16 (reference runs at
    # HIGHEST precision in f32) -> 3e-2 tolerance.
    out = jax.block_until_ready(transpose_conv2d_forward(x, params, is_tanh=False))
    ref = jax.block_until_ready(transpose_conv2d_reference(x, params, is_tanh=False))
    assert out.shape == (N, Cout, 2 * H, 2 * W), out.shape
    np.testing.assert_allclose(np.asarray(out), np.asarray(ref), rtol=3e-2, atol=3e-2)

    out_t = jax.block_until_ready(transpose_conv2d_forward(x, params, is_tanh=True))
    ref_t = jax.block_until_ready(transpose_conv2d_reference(x, params, is_tanh=True))
    np.testing.assert_allclose(np.asarray(out_t), np.asarray(ref_t), rtol=3e-2, atol=3e-2)

    print("KERNEL_OK")
</pallas_src>

<mosaic_0001>
module attributes {stable_mosaic.version = 11 : i64} {
  func.func @_convt_stats_kernel(%arg0: i32, %arg1: memref<36x512xbf16, #tpu.memory_space<vmem>>, %arg2: memref<32x36xbf16, #tpu.memory_space<vmem>>, %arg3: memref<32x1xf32, #tpu.memory_space<vmem>>, %arg4: memref<32x512xbf16, #tpu.memory_space<vmem>>, %arg5: memref<1x32x2xf32, #tpu.memory_space<vmem>>) attributes {dimension_semantics = [#tpu.dimension_semantics<parallel>], iteration_bounds = array<i64: 1>, scalar_prefetch = 0 : i64, scratch_operands = 0 : i64, tpu.core_type = #tpu.core_type<tc>, window_params = [{transform_indices = @transform_0, window_bounds = array<i64: 36, 512>}, {pipeline_mode = #tpu.pipeline_mode<synchronous>, transform_indices = @transform_1, window_bounds = array<i64: 32, 36>}, {pipeline_mode = #tpu.pipeline_mode<synchronous>, transform_indices = @transform_2, window_bounds = array<i64: 32, 1>}, {transform_indices = @transform_3, window_bounds = array<i64: 32, 512>}, {transform_indices = @transform_4, window_bounds = array<i64: 1, 32, 2>}]} {
    %c0 = arith.constant 0 : index
    %c0_0 = arith.constant 0 : index
    %0 = vector.load %arg2[%c0, %c0_0] : memref<32x36xbf16, #tpu.memory_space<vmem>>, vector<32x36xbf16>
    %c0_1 = arith.constant 0 : index
    %c0_2 = arith.constant 0 : index
    %1 = vector.load %arg1[%c0_1, %c0_2] : memref<36x512xbf16, #tpu.memory_space<vmem>>, vector<36x512xbf16>
    %cst = arith.constant dense<0.000000e+00> : vector<32x512xf32>
    %2 = tpu.matmul %0, %1, %cst {dimension_numbers = #tpu.dot_dimension_numbers<[1], [0], [0], [1], [0, 0, 1, 1], [], []>} : vector<32x36xbf16>, vector<36x512xbf16>, vector<32x512xf32> -> vector<32x512xf32>
    %c0_3 = arith.constant 0 : index
    %c0_4 = arith.constant 0 : index
    %3 = vector.load %arg3[%c0_3, %c0_4] : memref<32x1xf32, #tpu.memory_space<vmem>>, vector<32x1xf32>
    %4 = vector.broadcast %3 : vector<32x1xf32> to vector<32x512xf32>
    %5 = arith.addf %2, %4 : vector<32x512xf32>
    %6 = arith.truncf %5 : vector<32x512xf32> to vector<32x512xbf16>
    %c0_5 = arith.constant 0 : index
    %c0_6 = arith.constant 0 : index
    %7 = vector.load %arg4[%c0_5, %c0_6] : memref<32x512xbf16, #tpu.memory_space<vmem>>, vector<32x512xbf16>
    tpu.vector_store %arg4[%c0_5, %c0_6], %6 {strides = array<i32>} : memref<32x512xbf16, #tpu.memory_space<vmem>>, vector<32x512xbf16>,
    %cst_7 = arith.constant dense<0.000000e+00> : vector<32xf32>
    %8 = vector.multi_reduction <add>, %5, %cst_7 [1] : vector<32x512xf32> to vector<32xf32>
    %9 = vector.shape_cast %8 : vector<32xf32> to vector<32x1xf32>
    %10 = arith.mulf %5, %5 : vector<32x512xf32>
    %cst_8 = arith.constant dense<0.000000e+00> : vector<32xf32>
    %11 = vector.multi_reduction <add>, %10, %cst_8 [1] : vector<32x512xf32> to vector<32xf32>
    %12 = vector.shape_cast %11 : vector<32xf32> to vector<32x1xf32>
    %13 = tpu.concatenate %9, %12 in 1 : vector<32x1xf32>, vector<32x1xf32> -> vector<32x2xf32>
    %14 = vector.shape_cast %13 : vector<32x2xf32> to vector<1x32x2xf32>
    %c0_9 = arith.constant 0 : index
    %c0_10 = arith.constant 0 : index
    %c0_11 = arith.constant 0 : index
    %15 = vector.load %arg5[%c0_9, %c0_10, %c0_11] : memref<1x32x2xf32, #tpu.memory_space<vmem>>, vector<1x32x2xf32>
    tpu.vector_store %arg5[%c0_9, %c0_10, %c0_11], %14 {strides = array<i32>} : memref<1x32x2xf32, #tpu.memory_space<vmem>>, vector<1x32x2xf32>,
    return
  }
  func.func @transform_0(%arg0: i32) -> (i32, i32) {
    %c0_i32 = arith.constant 0 : i32
    %c0_i32_0 = arith.constant 0 : i32
    return %c0_i32, %arg0 : i32, i32
  }
  func.func @transform_1(%arg0: i32) -> (i32, i32) {
    %c0_i32 = arith.constant 0 : i32
    %c0_i32_0 = arith.constant 0 : i32
    %c0_i32_1 = arith.constant 0 : i32
    return %c0_i32, %c0_i32_0 : i32, i32
  }
  func.func @transform_2(%arg0: i32) -> (i32, i32) {
    %c0_i32 = arith.constant 0 : i32
    %c0_i32_0 = arith.constant 0 : i32
    %c0_i32_1 = arith.constant 0 : i32
    return %c0_i32, %c0_i32_0 : i32, i32
  }
  func.func @transform_3(%arg0: i32) -> (i32, i32) {
    %c0_i32 = arith.constant 0 : i32
    %c0_i32_0 = arith.constant 0 : i32
    return %c0_i32, %arg0 : i32, i32
  }
  func.func @transform_4(%arg0: i32) -> (i32, i32, i32) {
    %c0_i32 = arith.constant 0 : i32
    %c0_i32_0 = arith.constant 0 : i32
    %c0_i32_1 = arith.constant 0 : i32
    return %arg0, %c0_i32, %c0_i32_0 : i32, i32, i32
  }
}

module attributes {stable_mosaic.version = 11 : i64} {
  func.func @_bn_relu_kernel(%arg0: i32, %arg1: memref<32x512xbf16, #tpu.memory_space<vmem>>, %arg2: memref<32x1xf32, #tpu.memory_space<vmem>>, %arg3: memref<32x1xf32, #tpu.memory_space<vmem>>, %arg4: memref<32x512xf32, #tpu.memory_space<vmem>>) attributes {dimension_semantics = [#tpu.dimension_semantics<parallel>], iteration_bounds = array<i64: 1>, scalar_prefetch = 0 : i64, scratch_operands = 0 : i64, tpu.core_type = #tpu.core_type<tc>, window_params = [{transform_indices = @transform_0, window_bounds = array<i64: 32, 512>}, {pipeline_mode = #tpu.pipeline_mode<synchronous>, transform_indices = @transform_1, window_bounds = array<i64: 32, 1>}, {pipeline_mode = #tpu.pipeline_mode<synchronous>, transform_indices = @transform_2, window_bounds = array<i64: 32, 1>}, {transform_indices = @transform_3, window_bounds = array<i64: 32, 512>}]} {
    %c0 = arith.constant 0 : index
    %c0_0 = arith.constant 0 : index
    %0 = vector.load %arg1[%c0, %c0_0] : memref<32x512xbf16, #tpu.memory_space<vmem>>, vector<32x512xbf16>
    %1 = arith.extf %0 : vector<32x512xbf16> to vector<32x512xf32>
    %c0_1 = arith.constant 0 : index
    %c0_2 = arith.constant 0 : index
    %2 = vector.load %arg2[%c0_1, %c0_2] : memref<32x1xf32, #tpu.memory_space<vmem>>, vector<32x1xf32>
    %3 = vector.broadcast %2 : vector<32x1xf32> to vector<32x512xf32>
    %4 = arith.mulf %1, %3 : vector<32x512xf32>
    %c0_3 = arith.constant 0 : index
    %c0_4 = arith.constant 0 : index
    %5 = vector.load %arg3[%c0_3, %c0_4] : memref<32x1xf32, #tpu.memory_space<vmem>>, vector<32x1xf32>
    %6 = vector.broadcast %5 : vector<32x1xf32> to vector<32x512xf32>
    %7 = arith.addf %4, %6 : vector<32x512xf32>
    %cst = arith.constant 0.000000e+00 : f32
    %8 = vector.broadcast %cst : f32 to vector<32x512xf32>
    %9 = arith.maximumf %7, %8 : vector<32x512xf32>
    %c0_5 = arith.constant 0 : index
    %c0_6 = arith.constant 0 : index
    %10 = vector.load %arg4[%c0_5, %c0_6] : memref<32x512xf32, #tpu.memory_space<vmem>>, vector<32x512xf32>
    tpu.vector_store %arg4[%c0_5, %c0_6], %9 {strides = array<i32>} : memref<32x512xf32, #tpu.memory_space<vmem>>, vector<32x512xf32>,
    return
  }
  func.func @transform_0(%arg0: i32) -> (i32, i32) {
    %c0_i32 = arith.constant 0 : i32
    %c0_i32_0 = arith.constant 0 : i32
    return %c0_i32, %arg0 : i32, i32
  }
  func.func @transform_1(%arg0: i32) -> (i32, i32) {
    %c0_i32 = arith.constant 0 : i32
    %c0_i32_0 = arith.constant 0 : i32
    %c0_i32_1 = arith.constant 0 : i32
    return %c0_i32, %c0_i32_0 : i32, i32
  }
  func.func @transform_2(%arg0: i32) -> (i32, i32) {
    %c0_i32 = arith.constant 0 : i32
    %c0_i32_0 = arith.constant 0 : i32
    %c0_i32_1 = arith.constant 0 : i32
    return %c0_i32, %c0_i32_0 : i32, i32
  }
  func.func @transform_3(%arg0: i32) -> (i32, i32) {
    %c0_i32 = arith.constant 0 : i32
    %c0_i32_0 = arith.constant 0 : i32
    return %c0_i32, %arg0 : i32, i32
  }
}

</mosaic_0001>

<bundles_post_ra>
// kernel: tile.18
= control target key start
LH: loop header
LB: loop body
LE: loop exit
PB: predicated region body
PF: predicated region fallthrough
CT: control target
= control target key end

     0   :  { %2 = vsyncpa [#allocation1], 0  ;;  %s42_s6 = smov [#allocation0]   ;;  %s59_s0 = inlined_call_operand.hbm [shape: f32[8], index: 0, kind: input, shape index: {}]   ;;  %s60_s1 = inlined_call_operand.vmem [shape: f32[4,8], index: 1, kind: output, shape index: {}]  }
   0x1   :  { %s9_s7 = sshll.u32 %s42_s6, 4  ;;  %s10_s7 = int_to_ptr.vmem [resolvable:$true] %s9_s7 }
   0x2   :  { %s28_s8 = scalar_lea.vmem %s10_s7, 16  ;;  %s32_s9 = scalar_lea.vmem %s10_s7, 32 }
   0x3   :  { %p29_p0 = scmp.ne.s32.totalorder %s10_s7, %s28_s8  ;;  %p33_p1 = scmp.lt.s32.totalorder %s10_s7, %s10_s7 }
   0x4   :  { %p34_p2 = scmp.lt.s32.totalorder %s32_s9, %s28_s8 }
   0x6   :  { %p35_p3 = por %p34_p2, %p33_p1 }
   0x8   :  { %p36_p4 = pnand %p35_p3, %p29_p0 }
   0xa   :  { %39 = shalt.err (!%p36_p4)
}
   0xb   :  { %12 = dma.hbm_to_vmem [thread:$0]  %s59_s0, 16, %s10_s7, [#allocation1]  }
   0xc   :  { %40 = dma.done.wait [#allocation1], 16  }
   0xd   :  { %41 = vsyncadd [#allocation1], 4294967280  ;;  %v16_v0 = vld [vmem:[#allocation0] ss:$0 sm:$0xff] }
   0xe   :  { %17 = vst [vmem:[%s60_s1] sm:$0xf] %v16_v0 }
   0xf   :  { %18 = vsyncpa [#allocation1], 1 }

// kernel: tile.0
= control target key start
LH: loop header
LB: loop body
LE: loop exit
PB: predicated region body
PF: predicated region fallthrough
CT: control target
= control target key end

     0   :  { %s67_s8 = smov 125   ;;  %vm8_vm0 = vcmask 7168   ;;  %s68_s11 = smov 126   ;;  %s118_s0 = inlined_call_operand.vmem [shape: f32[4,8], index: 0, kind: input, shape index: {}]   ;;  %s119_s1 = inlined_call_operand.vmem [shape: f32[32,1], index: 1, kind: output, shape index: {}]  }
   0x1   :  { %v5_v0 = vld [vmem:[%s118_s0] sm:$0xf]  ;;  %s66_s0 = smov 127   ;;  %s69_s12 = smov 124  }
   0x2   :  { %6 = vst [vmem:[#allocation0] sm:$0xf] %v5_v0  ;;  %s70_s13 = smov 123   ;;  %s71_s14 = smov 122  }
   0x3   :  { %s72_s15 = smov 121  }
   0x9   :  { %v10_v1 = vld [vmem:[#allocation0] sm:$0xf]  }
   0xa   :  { %v22_v2 = vld [vmem:[#allocation0] sm:$0xf]   ;;  %11 = vrot.lane.b32.xlu0 %v10_v1, %s66_s0 }
   0xb   :  { %23 = vrot.lane.b32.xlu1 %v22_v2, %s67_s8  ;;  %v16_v3 = vld [vmem:[#allocation0] sm:$0xf]  }
   0xc   :  { %v28_v4 = vld [vmem:[#allocation0] sm:$0xf]  }
   0xd   :  { %v7_v5 = vld [vmem:[#allocation0] sm:$0xf]  }
   0xe   :  { %9 = vst.msk [vmem:[%s119_s1] ss:$8 sm:$0xf] %vm8_vm0, %v7_v5   ;;  %17 = vrot.lane.b32.xlu0 %v16_v3, %s68_s11  ;;  %v34_v6 = vld [vmem:[#allocation0] sm:$0xf]  }
   0xf   :  { %29 = vrot.lane.b32.xlu1 %v28_v4, %s69_s12  ;;  %v40_v7 = vld [vmem:[#allocation0] sm:$0xf]  }
  0x10   :  { %v46_v8 = vld [vmem:[#allocation0] sm:$0xf]  }
  0x12   :  { %35 = vrot.lane.b32.xlu0 %v34_v6, %s70_s13 }
  0x13   :  { %41 = vrot.lane.b32.xlu1 %v40_v7, %s71_s14 }
  0x16   :  { %47 = vrot.lane.b32.xlu0 %v46_v8, %s72_s15 }
  0x7c   :  { %v12_v9 = vpop.permute.xlu0 %11  }
  0x7d   :  { %v24_v10 = vpop.permute.xlu1 %23   ;;  %52 = vst.msk [vmem:[%s119_s1 + $0x1] ss:$8 sm:$0xf] %vm8_vm0, %v12_v9  }
  0x7e   :  { %54 = vst.msk [vmem:[%s119_s1 + $0x3] ss:$8 sm:$0xf] %vm8_vm0, %v24_v10  }
  0x80   :  { %v18_v11 = vpop.permute.xlu0 %17  }
  0x81   :  { %v30_v12 = vpop.permute.xlu1 %29   ;;  %53 = vst.msk [vmem:[%s119_s1 + $0x2] ss:$8 sm:$0xf] %vm8_vm0, %v18_v11  }
  0x82   :  { %55 = vst.msk [vmem:[%s119_s1 + $0x4] ss:$8 sm:$0xf] %vm8_vm0, %v30_v12  }
  0x84   :  { %v36_v13 = vpop.permute.xlu0 %35  }
  0x85   :  { %v42_v14 = vpop.permute.xlu1 %41   ;;  %56 = vst.msk [vmem:[%s119_s1 + $0x5] ss:$8 sm:$0xf] %vm8_vm0, %v36_v13  }
  0x86   :  { %57 = vst.msk [vmem:[%s119_s1 + $0x6] ss:$8 sm:$0xf] %vm8_vm0, %v42_v14  }
  0x88   :  { %v48_v15 = vpop.permute.xlu0 %47  }
  0x89   :  { %58 = vst.msk [vmem:[%s119_s1 + $0x7] ss:$8 sm:$0xf] %vm8_vm0, %v48_v15  }

// kernel: tile.28
= control target key start
LH: loop header
LB: loop body
LE: loop exit
PB: predicated region body
PF: predicated region fallthrough
CT: control target
= control target key end

     0   :  { %s22_s0 = inlined_call_operand.vmem [shape: f32[8], index: 0, kind: input, shape index: {}]   ;;  %s23_s1 = inlined_call_operand.vmem [shape: f32[4,8], index: 1, kind: output, shape index: {}]  }
   0x1   :  { %v4_v0 = vld [vmem:[%s22_s0] ss:$0 sm:$0xff] }
   0x2   :  { %5 = vst [vmem:[%s23_s1] sm:$0xf] %v4_v0 }

</bundles_post_ra>
